<compile_context>
chip_gen: v7x
topology: tpu7x:2x2x1
jax: 0.10.0
libtpu: 0.0.40
codegen_flags: <defaults>
</compile_context>

<pallas_src>
import math

import jax
import jax.numpy as jnp
import numpy as np
from jax.experimental import pallas as pl
from jax.experimental.pallas import tpu as pltpu

BN_EPS = 1e-5
LANE = 128


# ----------------------------------------------------------------------------
# Generation-aware tuning knobs
# ----------------------------------------------------------------------------
def _device_kind():
    try:
        return jax.devices()[0].device_kind.lower()
    except Exception:
        return ""


def _is_v5e():
    k = _device_kind()
    return ("v5e" in k) or ("v5 lite" in k) or ("v5litepod" in k)


def _vmem_config():
    """(per-grid-step VMEM budget, scoped VMEM limit) tuned per generation."""
    cap = None
    try:
        cap = getattr(pltpu.get_tpu_info(), "vmem_capacity_bytes", None)
    except Exception:
        cap = None
    if not cap:
        cap = 64 * 1024 * 1024                 # conservative default (v7x-sized VMEM)
    if cap >= 100 * 1024 * 1024:               # v5e / v6e: 128 MiB physical VMEM
        return 24 * 1024 * 1024, 96 * 1024 * 1024
    return 8 * 1024 * 1024, 32 * 1024 * 1024   # v7x: 64 MiB physical VMEM


_BUDGET, _LIMIT = _vmem_config()
_PREFER_CT128 = _is_v5e()                      # v5e MXU is 128-wide: ct=256 buys nothing


def _params(semantics):
    return pltpu.CompilerParams(dimension_semantics=semantics,
                                vmem_limit_bytes=_LIMIT)


# ----------------------------------------------------------------------------
# Tile sizing helpers
# ----------------------------------------------------------------------------
def _round_up(x, m):
    return ((x + m - 1) // m) * m


def _pick_cout_tile(cpo):
    if cpo <= 128:
        return cpo
    if (not _PREFER_CT128) and cpo % 256 == 0:
        return 256
    return 128


def _pick_conv_tile_h(H, W, cpi, ct):
    """Largest divisor of H whose 3x3-conv per-step working set fits the VMEM budget."""
    fixed = 2 * 9 * cpi * ct * 2 + (1 << 20)          # double-buffered weight tile + slack

    def need(th):
        return (fixed
                + 2 * (th + 2) * (W + 2) * cpi * 2    # halo window scratch + loaded value
                + 2 * th * W * ct * 2                 # double-buffered bf16 output tile
                + th * W * ct * 4                     # f32 accumulator
                + 2 * th * W * cpi * 2)               # per-tap slice temporaries

    best = 1
    for d in range(1, H + 1):
        if H % d == 0 and need(d) <= _BUDGET:
            best = d
    return best


def _pick_rows_tile(rows, bytes_per_row):
    """Row tile for the mem-bound epilogue passes; grid uses pl.cdiv + masked edge block."""
    cap = max(1, _BUDGET // max(1, bytes_per_row))
    return int(min(rows, cap))


def _pick_m_tile(M, bytes_per_row):
    """Divisor of M (multiple of 8 when possible) fitting the budget.  It must divide M
    exactly because the packed conv pass also emits BN partial statistics per tile."""
    cap = int(max(1, min(M, _BUDGET // max(1, bytes_per_row))))
    divs = [d for d in range(1, int(math.isqrt(M)) + 1) if M % d == 0]
    divs = sorted(set(divs + [M // d for d in divs]))
    ok8 = [d for d in divs if d % 8 == 0]
    under = [d for d in ok8 if d <= cap]
    if under:
        return under[-1]
    if ok8:
        return ok8[0]
    return M


# ----------------------------------------------------------------------------
# Kernels
# ----------------------------------------------------------------------------
def _conv3x3_stats_kernel(x_hbm, w_ref, b_ref, y_ref, st_ref, xwin, sem):
    """3x3 'same' conv for one (batch, row-tile, Cout-block) as 9 per-tap MXU matmuls,
    plus per-tile partial BatchNorm statistics (sum, sum of squares).

    x_hbm:  (N, H+2, W+2, Cin)  bf16  whole spatially-padded input, left in HBM (pl.ANY)
    w_ref:  (3, 3, Cin, Ct)     bf16
    b_ref:  (1, Ct)             f32
    y_ref:  (1, th, W, Ct)      bf16  conv + bias (pre-BN)
    st_ref: (1, 1, 2, Ct)       f32   [sum, sum_sq] over this tile
    xwin:   (th+2, W+2, Cin)    bf16  VMEM halo window (scratch)
    """
    n = pl.program_id(0)
    h = pl.program_id(1)
    c = pl.program_id(2)
    _, th, W, ct = y_ref.shape
    cin = xwin.shape[-1]

    # One halo-window DMA per (n, h); re-used for every Cout block (the Cout grid axis is
    # innermost and the whole grid is "arbitrary", so steps run in order).
    @pl.when(c == 0)
    def _():
        cp = pltpu.make_async_copy(x_hbm.at[n, pl.ds(h * th, th + 2)], xwin, sem)
        cp.start()
        cp.wait()

    x = xwin[...]                                      # (th+2, W+2, Cin) bf16
    wv = w_ref[...]                                    # (3, 3, Cin, Ct) bf16
    acc = jnp.zeros((th * W, ct), jnp.float32)
    for dy in range(3):
        for dx in range(3):
            xs = x[dy:dy + th, dx:dx + W, :].reshape(th * W, cin)
            acc = acc + jnp.dot(xs, wv[dy, dx], preferred_element_type=jnp.float32)
    acc = acc + b_ref[...]

    y_ref[...] = acc.reshape(y_ref.shape).astype(y_ref.dtype)
    s1 = jnp.sum(acc, axis=0, keepdims=True)
    s2 = jnp.sum(acc * acc, axis=0, keepdims=True)
    st_ref[...] = jnp.concatenate([s1, s2], axis=0).reshape(st_ref.shape)


def _matmul_stats_kernel(x_ref, w_ref, b_ref, y_ref, st_ref):
    """Pointwise matmul (first conv with the 9*Cin taps pre-packed into K<=128 lanes)
    + bias + per-tile BN partial statistics.

    x_ref: (tm, K) bf16; w_ref: (K, Ct) bf16; b_ref: (1, Ct) f32
    y_ref: (tm, Ct) bf16; st_ref: (1, 2, Ct) f32
    """
    acc = jnp.dot(x_ref[...], w_ref[...], preferred_element_type=jnp.float32)
    acc = acc + b_ref[...]
    y_ref[...] = acc.astype(y_ref.dtype)
    s1 = jnp.sum(acc, axis=0, keepdims=True)
    s2 = jnp.sum(acc * acc, axis=0, keepdims=True)
    st_ref[...] = jnp.concatenate([s1, s2], axis=0).reshape(st_ref.shape)


def _bn_relu_kernel(y_ref, sc_ref, sh_ref, o_ref):
    """Folded BN affine (y*scale + shift) + ReLU on lane-dense (rows, W, C) blocks."""
    z = y_ref[...].astype(jnp.float32) * sc_ref[...] + sh_ref[...]
    o_ref[...] = jnp.maximum(z, 0.0).astype(o_ref.dtype)


def _bn_relu_pool_kernel(y_ref, sc_ref, sh_ref, o_ref):
    """Fused BN affine + ReLU + MaxPool2d(2, 2).

    y_ref: (tr, 2, W, C) bf16 (row pairs of the pre-BN conv output; lane/sublane dense)
    o_ref: (tr, W//2, C) bf16
    """
    tr, _, w, c = y_ref.shape
    z = jnp.maximum(y_ref[...].astype(jnp.float32) * sc_ref[...] + sh_ref[...], 0.0)
    zh = jnp.max(z, axis=1)                             # pool the row pair -> (tr, W, C)
    o_ref[...] = jnp.max(zh.reshape(tr, w // 2, 2, c), axis=2).astype(o_ref.dtype)


def _maxpool_kernel(x_ref, o_ref):
    """Standalone MaxPool2d(2, 2) (only used when an 'M' does not follow a conv block)."""
    tr, _, w, c = x_ref.shape
    zh = jnp.max(x_ref[...], axis=1)
    o_ref[...] = jnp.max(zh.reshape(tr, w // 2, 2, c), axis=2)


# ----------------------------------------------------------------------------
# Conv passes (conv + bias + partial BN statistics)
# ----------------------------------------------------------------------------
def _conv_pass_3x3(x, w, b):
    """x: (N, H, W, Cp_in) bf16 with channels padded to a multiple of 128.
    Returns (y: (N, H, W, Cp_out) bf16 pre-BN conv+bias, sums: (2, Cp_out) f32, count)."""
    N, H, W, cpi = x.shape
    _, _, cin, cout = w.shape
    cpo = _round_up(cout, LANE)

    wp = jnp.pad(w.astype(jnp.bfloat16),
                 ((0, 0), (0, 0), (0, cpi - cin), (0, cpo - cout)))
    bp = jnp.pad(b, (0, cpo - cout)).reshape(1, cpo).astype(jnp.float32)

    x_sp = jnp.pad(x, ((0, 0), (1, 1), (1, 1), (0, 0)))              # 'same' spatial pad

    ct = _pick_cout_tile(cpo)
    th = _pick_conv_tile_h(H, W, cpi, ct)
    g_h, g_co = H // th, cpo // ct
    grid = (N, g_h, g_co)

    flops = 2 * N * H * W * 9 * cpi * cpo
    bytes_accessed = (N * (H + 2) * (W + 2) * cpi * 2
                      + N * g_h * g_co * 9 * cpi * ct * 2
                      + N * H * W * cpo * 2 + N * g_h * 2 * cpo * 4)

    y, st = pl.pallas_call(
        _conv3x3_stats_kernel,
        grid=grid,
        in_specs=[pl.BlockSpec(memory_space=pl.ANY),
                  pl.BlockSpec((3, 3, cpi, ct), lambda n, h, c: (0, 0, 0, c)),
                  pl.BlockSpec((1, ct), lambda n, h, c: (0, c))],
        out_specs=[pl.BlockSpec((1, th, W, ct), lambda n, h, c: (n, h, 0, c)),
                   pl.BlockSpec((1, 1, 2, ct), lambda n, h, c: (n, h, 0, c))],
        out_shape=[jax.ShapeDtypeStruct((N, H, W, cpo), jnp.bfloat16),
                   jax.ShapeDtypeStruct((N, g_h, 2, cpo), jnp.float32)],
        scratch_shapes=[pltpu.VMEM((th + 2, W + 2, cpi), jnp.bfloat16),
                        pltpu.SemaphoreType.DMA(())],
        # All axes "arbitrary": the halo-window scratch is re-used across the Cout axis, so
        # grid steps are not independent and must execute in lexicographic order.
        compiler_params=_params(("arbitrary", "arbitrary", "arbitrary")),
        cost_estimate=pl.CostEstimate(flops=flops, transcendentals=0,
                                      bytes_accessed=bytes_accessed),
    )(x_sp, wp, bp)

    sums = jnp.sum(st, axis=(0, 1))                                   # (2, cpo) f32
    return y, sums, N * H * W


def _conv_pass_packed(x, w, b):
    """First conv: 9*Cin <= 128, so the 27 real taps are packed by the wrapper into a single
    K=128 matmul (no halo, no Cin padding to 128).  x: (N, H, W, Cin) bf16, real channels."""
    N, H, W, cin = x.shape
    cout = w.shape[3]
    cpo = _round_up(cout, LANE)
    K = LANE

    xp = jnp.pad(x, ((0, 0), (1, 1), (1, 1), (0, 0)))
    taps = [xp[:, dy:dy + H, dx:dx + W, :] for dy in range(3) for dx in range(3)]
    x9 = jnp.concatenate(taps, axis=-1)                               # (N, H, W, 9*Cin)
    x9 = jnp.pad(x9, ((0, 0), (0, 0), (0, 0), (0, K - 9 * cin)))
    M = N * H * W
    x2 = x9.reshape(M, K)

    wp = jnp.pad(w.astype(jnp.bfloat16).reshape(9 * cin, cout),
                 ((0, K - 9 * cin), (0, cpo - cout)))
    bp = jnp.pad(b, (0, cpo - cout)).reshape(1, cpo).astype(jnp.float32)

    ct = _pick_cout_tile(cpo)
    g_co = cpo // ct
    bytes_per_row = 2 * K * 2 + 2 * ct * 2 + ct * 4 + K * 2
    tm = _pick_m_tile(M, bytes_per_row)
    g_m = M // tm

    flops = 2 * M * K * cpo
    bytes_accessed = M * K * 2 * g_co + K * cpo * 2 + M * cpo * 2 + g_m * 2 * cpo * 4

    y, st = pl.pallas_call(
        _matmul_stats_kernel,
        grid=(g_m, g_co),
        in_specs=[pl.BlockSpec((tm, K), lambda m, c: (m, 0)),
                  pl.BlockSpec((K, ct), lambda m, c: (0, c)),
                  pl.BlockSpec((1, ct), lambda m, c: (0, c))],
        out_specs=[pl.BlockSpec((tm, ct), lambda m, c: (m, c)),
                   pl.BlockSpec((1, 2, ct), lambda m, c: (m, 0, c))],
        out_shape=[jax.ShapeDtypeStruct((M, cpo), jnp.bfloat16),
                   jax.ShapeDtypeStruct((g_m, 2, cpo), jnp.float32)],
        compiler_params=_params(("parallel", "parallel")),
        cost_estimate=pl.CostEstimate(flops=flops, transcendentals=0,
                                      bytes_accessed=bytes_accessed),
    )(x2, wp, bp)

    sums = jnp.sum(st, axis=0)                                        # (2, cpo) f32
    return y.reshape(N, H, W, cpo), sums, M


# ----------------------------------------------------------------------------
# BatchNorm fold + fused epilogues
# ----------------------------------------------------------------------------
def _fold_bn(sums, count, gamma_p, beta_p):
    """Training-mode BatchNorm batch statistics (biased variance) folded with gamma/beta
    into a single per-channel scale/shift.  Padded channels carry gamma=0 -> scale=0."""
    # TODO(synk): BatchNorm running_mean / running_var buffers are not updated
    # (forward-only, train-mode normalization semantics only).
    mean = sums[0] / count
    var = jnp.maximum(sums[1] / count - mean * mean, 0.0)
    scale = gamma_p * jax.lax.rsqrt(var + BN_EPS)
    shift = beta_p - mean * scale
    return scale, shift


def _bn_relu_maybe_pool(y, scale, shift, fuse_pool):
    """y: (N, H, W, C) bf16 pre-BN conv output -> bf16 activation (2x2-pooled if fuse_pool)."""
    N, H, W, C = y.shape
    if fuse_pool:
        ho, wo = H // 2, W // 2
        rows = N * ho
        yr = y.reshape(rows, 2, W, C)                                 # metadata-only reshape
        sc = scale.reshape(1, 1, 1, C)
        sh = shift.reshape(1, 1, 1, C)
        bytes_per_row = 2 * 2 * W * C * 2 + 2 * wo * C * 2 + 2 * W * C * 4
        tr = _pick_rows_tile(rows, bytes_per_row)
        out = pl.pallas_call(
            _bn_relu_pool_kernel,
            grid=(pl.cdiv(rows, tr),),
            in_specs=[pl.BlockSpec((tr, 2, W, C), lambda r: (r, 0, 0, 0)),
                      pl.BlockSpec((1, 1, 1, C), lambda r: (0, 0, 0, 0)),
                      pl.BlockSpec((1, 1, 1, C), lambda r: (0, 0, 0, 0))],
            out_specs=pl.BlockSpec((tr, wo, C), lambda r: (r, 0, 0)),
            out_shape=jax.ShapeDtypeStruct((rows, wo, C), jnp.bfloat16),
            compiler_params=_params(("parallel",)),
            cost_estimate=pl.CostEstimate(
                flops=6 * N * H * W * C, transcendentals=0,
                bytes_accessed=N * H * W * C * 2 + rows * wo * C * 2),
        )(yr, sc, sh)
        return out.reshape(N, ho, wo, C)

    rows = N * H
    yr = y.reshape(rows, W, C)
    sc = scale.reshape(1, 1, C)
    sh = shift.reshape(1, 1, C)
    bytes_per_row = 2 * W * C * 2 * 2 + W * C * 4
    tr = _pick_rows_tile(rows, bytes_per_row)
    out = pl.pallas_call(
        _bn_relu_kernel,
        grid=(pl.cdiv(rows, tr),),
        in_specs=[pl.BlockSpec((tr, W, C), lambda r: (r, 0, 0)),
                  pl.BlockSpec((1, 1, C), lambda r: (0, 0, 0)),
                  pl.BlockSpec((1, 1, C), lambda r: (0, 0, 0))],
        out_specs=pl.BlockSpec((tr, W, C), lambda r: (r, 0, 0)),
        out_shape=jax.ShapeDtypeStruct((rows, W, C), jnp.bfloat16),
        compiler_params=_params(("parallel",)),
        cost_estimate=pl.CostEstimate(
            flops=3 * rows * W * C, transcendentals=0,
            bytes_accessed=2 * rows * W * C * 2),
    )(yr, sc, sh)
    return out.reshape(N, H, W, C)


def maxpool2x2(x):
    """(N, H, W, C) -> (N, H//2, W//2, C).  Fallback for an 'M' that does not directly
    follow a conv block (never the case in standard VGG cfgs)."""
    N, H, W, C = x.shape
    ho, wo = H // 2, W // 2
    rows = N * ho
    xr = x.reshape(rows, 2, W, C)
    isz = x.dtype.itemsize
    bytes_per_row = 2 * 2 * W * C * isz + 2 * wo * C * isz
    tr = _pick_rows_tile(rows, bytes_per_row)
    out = pl.pallas_call(
        _maxpool_kernel,
        grid=(pl.cdiv(rows, tr),),
        in_specs=[pl.BlockSpec((tr, 2, W, C), lambda r: (r, 0, 0, 0))],
        out_specs=pl.BlockSpec((tr, wo, C), lambda r: (r, 0, 0)),
        out_shape=jax.ShapeDtypeStruct((rows, wo, C), x.dtype),
        compiler_params=_params(("parallel",)),
        cost_estimate=pl.CostEstimate(
            flops=3 * N * H * W * C, transcendentals=0,
            bytes_accessed=(N * H * W * C + rows * wo * C) * isz),
    )(xr)
    return out.reshape(N, ho, wo, C)


# ----------------------------------------------------------------------------
# Parameter init + forward (matches VGG_Branch with batch_norm=True, training mode)
# ----------------------------------------------------------------------------
def init_params(cfg_list, in_channels, key):
    """Deterministic init matching VGG_Branch._initialize_weights."""
    params = []
    cin = in_channels
    for v in cfg_list:
        if v == 'M':
            continue
        key, sub = jax.random.split(key)
        std = math.sqrt(2.0 / (3 * 3 * v))             # N(0, sqrt(2/(k*k*Cout)))
        w = jax.random.normal(sub, (3, 3, cin, v), jnp.float32) * std   # HWIO
        b = jnp.zeros((v,), jnp.float32)               # conv bias -> 0
        gamma = jnp.ones((v,), jnp.float32)            # BN weight -> 1
        beta = jnp.zeros((v,), jnp.float32)            # BN bias -> 0
        params.append((w, b, gamma, beta))
        cin = v
    return params


def vgg_branch_forward(x_nchw, params, cfg_list):
    """Pallas implementation of VGG_Branch.forward (batch_norm=True, train-mode BN)."""
    act = jnp.transpose(x_nchw, (0, 2, 3, 1)).astype(jnp.bfloat16)     # NCHW -> NHWC, bf16
    out_c = act.shape[-1]
    first = True
    i, pi = 0, 0
    while i < len(cfg_list):
        v = cfg_list[i]
        if v == 'M':
            act = maxpool2x2(act)
            i += 1
            continue

        w, b, g, bt = params[pi]
        pi += 1
        cin, cout = w.shape[2], w.shape[3]
        fuse = (i + 1 < len(cfg_list)) and (cfg_list[i + 1] == 'M')

        if first and 9 * cin <= LANE:
            y, sums, count = _conv_pass_packed(act[..., :cin], w, b)
        else:
            cpi = _round_up(cin, LANE)
            if act.shape[-1] < cpi:
                act = jnp.pad(act, ((0, 0), (0, 0), (0, 0), (0, cpi - act.shape[-1])))
            y, sums, count = _conv_pass_3x3(act, w, b)

        cpo = y.shape[-1]
        gp = jnp.pad(g, (0, cpo - cout)).astype(jnp.float32)            # padded gamma = 0
        btp = jnp.pad(bt, (0, cpo - cout)).astype(jnp.float32)
        scale, shift = _fold_bn(sums, count, gp, btp)
        act = _bn_relu_maybe_pool(y, scale, shift, fuse)

        out_c = cout
        first = False
        i += 2 if fuse else 1

    act = act[..., :out_c].astype(jnp.float32)                          # drop channel padding
    return jnp.transpose(act, (0, 3, 1, 2))                             # NHWC -> NCHW


# ----------------------------------------------------------------------------
# Pure-JAX reference (mirrors the kernel's precision: bf16 MXU operands / intermediates,
# f32 accumulation and BN statistics)
# ----------------------------------------------------------------------------
def vgg_branch_reference(x_nchw, params, cfg_list):
    act = jnp.transpose(x_nchw, (0, 2, 3, 1)).astype(jnp.bfloat16)
    pi = 0
    for v in cfg_list:
        if v == 'M':
            N, H, W, C = act.shape
            act = act.reshape(N, H // 2, 2, W // 2, 2, C).max(axis=(2, 4))
        else:
            w, b, g, bt = params[pi]
            pi += 1
            y = jax.lax.conv_general_dilated(
                act.astype(jnp.bfloat16), w.astype(jnp.bfloat16),
                window_strides=(1, 1), padding='SAME',
                dimension_numbers=('NHWC', 'HWIO', 'NHWC'),
                preferred_element_type=jnp.float32) + b
            mean = y.mean(axis=(0, 1, 2))
            var = jnp.square(y - mean).mean(axis=(0, 1, 2))
            scale = g * jax.lax.rsqrt(var + BN_EPS)
            shift = bt - mean * scale
            yq = y.astype(jnp.bfloat16).astype(jnp.float32)   # kernel stores pre-BN as bf16
            act = jnp.maximum(yq * scale + shift, 0.0).astype(jnp.bfloat16)
    return jnp.transpose(act.astype(jnp.float32), (0, 3, 1, 2))


# ----------------------------------------------------------------------------
if __name__ == "__main__":
    # Small synthetic config consistent with make_layers semantics
    # (conv3x3 -> BN -> ReLU blocks and 'M' maxpools).
    cfg_small = [8, 'M', 16, 16, 'M']
    in_channels = 4

    key = jax.random.PRNGKey(0)
    key, pkey, xkey = jax.random.split(key, 3)

    params = init_params(cfg_small, in_channels, pkey)
    x = jax.random.normal(xkey, (2, in_channels, 16, 16), jnp.float32)   # NCHW

    out = jax.block_until_ready(vgg_branch_forward(x, params, cfg_small))
    assert out.shape == (2, 16, 4, 4), out.shape

    ref = jax.block_until_ready(vgg_branch_reference(x, params, cfg_small))
    if not np.allclose(np.asarray(out), np.asarray(ref), rtol=2e-2, atol=2e-2):
        err = float(np.max(np.abs(np.asarray(out) - np.asarray(ref))))
        raise AssertionError(
            f"Pallas VGG_Branch output does not match reference (max abs err {err:.4e})")

    print("KERNEL_OK")
</pallas_src>

<mosaic_0001>
module attributes {stable_mosaic.version = 11 : i64} {
  func.func @_matmul_stats_kernel(%arg0: i32, %arg1: i32, %arg2: memref<512x128xbf16, #tpu.memory_space<vmem>>, %arg3: memref<128x128xbf16, #tpu.memory_space<vmem>>, %arg4: memref<1x128xf32, #tpu.memory_space<vmem>>, %arg5: memref<512x128xbf16, #tpu.memory_space<vmem>>, %arg6: memref<1x2x128xf32, #tpu.memory_space<vmem>>) attributes {dimension_semantics = [#tpu.dimension_semantics<parallel>, #tpu.dimension_semantics<parallel>], iteration_bounds = array<i64: 1, 1>, scalar_prefetch = 0 : i64, scratch_operands = 0 : i64, tpu.core_type = #tpu.core_type<tc>, window_params = [{transform_indices = @transform_0, window_bounds = array<i64: 512, 128>}, {transform_indices = @transform_1, window_bounds = array<i64: 128, 128>}, {transform_indices = @transform_2, window_bounds = array<i64: 1, 128>}, {transform_indices = @transform_3, window_bounds = array<i64: 512, 128>}, {transform_indices = @transform_4, window_bounds = array<i64: 1, 2, 128>}]} {
    %c0 = arith.constant 0 : index
    %c0_0 = arith.constant 0 : index
    %0 = vector.load %arg2[%c0, %c0_0] : memref<512x128xbf16, #tpu.memory_space<vmem>>, vector<512x128xbf16>
    %c0_1 = arith.constant 0 : index
    %c0_2 = arith.constant 0 : index
    %1 = vector.load %arg3[%c0_1, %c0_2] : memref<128x128xbf16, #tpu.memory_space<vmem>>, vector<128x128xbf16>
    %cst = arith.constant dense<0.000000e+00> : vector<512x128xf32>
    %2 = tpu.matmul %0, %1, %cst {dimension_numbers = #tpu.dot_dimension_numbers<[1], [0], [0], [1], [0, 0, 1, 1], [], []>} : vector<512x128xbf16>, vector<128x128xbf16>, vector<512x128xf32> -> vector<512x128xf32>
    %c0_3 = arith.constant 0 : index
    %c0_4 = arith.constant 0 : index
    %3 = vector.load %arg4[%c0_3, %c0_4] : memref<1x128xf32, #tpu.memory_space<vmem>>, vector<1x128xf32>
    %4 = vector.broadcast %3 : vector<1x128xf32> to vector<512x128xf32>
    %5 = arith.addf %2, %4 : vector<512x128xf32>
    %6 = arith.truncf %5 : vector<512x128xf32> to vector<512x128xbf16>
    %c0_5 = arith.constant 0 : index
    %c0_6 = arith.constant 0 : index
    %7 = vector.load %arg5[%c0_5, %c0_6] : memref<512x128xbf16, #tpu.memory_space<vmem>>, vector<512x128xbf16>
    tpu.vector_store %arg5[%c0_5, %c0_6], %6 {strides = array<i32>} : memref<512x128xbf16, #tpu.memory_space<vmem>>, vector<512x128xbf16>,
    %cst_7 = arith.constant dense<0.000000e+00> : vector<128xf32>
    %8 = vector.multi_reduction <add>, %5, %cst_7 [0] : vector<512x128xf32> to vector<128xf32>
    %9 = vector.shape_cast %8 : vector<128xf32> to vector<1x128xf32>
    %10 = arith.mulf %5, %5 : vector<512x128xf32>
    %cst_8 = arith.constant dense<0.000000e+00> : vector<128xf32>
    %11 = vector.multi_reduction <add>, %10, %cst_8 [0] : vector<512x128xf32> to vector<128xf32>
    %12 = vector.shape_cast %11 : vector<128xf32> to vector<1x128xf32>
    %13 = tpu.concatenate %9, %12 in 0 : vector<1x128xf32>, vector<1x128xf32> -> vector<2x128xf32>
    %14 = vector.shape_cast %13 : vector<2x128xf32> to vector<1x2x128xf32>
    %c0_9 = arith.constant 0 : index
    %c0_10 = arith.constant 0 : index
    %c0_11 = arith.constant 0 : index
    %15 = vector.load %arg6[%c0_9, %c0_10, %c0_11] : memref<1x2x128xf32, #tpu.memory_space<vmem>>, vector<1x2x128xf32>
    tpu.vector_store %arg6[%c0_9, %c0_10, %c0_11], %14 {strides = array<i32>} : memref<1x2x128xf32, #tpu.memory_space<vmem>>, vector<1x2x128xf32>,
    return
  }
  func.func @transform_0(%arg0: i32, %arg1: i32) -> (i32, i32) {
    %c0_i32 = arith.constant 0 : i32
    %c0_i32_0 = arith.constant 0 : i32
    return %arg0, %c0_i32 : i32, i32
  }
  func.func @transform_1(%arg0: i32, %arg1: i32) -> (i32, i32) {
    %c0_i32 = arith.constant 0 : i32
    %c0_i32_0 = arith.constant 0 : i32
    return %c0_i32, %arg1 : i32, i32
  }
  func.func @transform_2(%arg0: i32, %arg1: i32) -> (i32, i32) {
    %c0_i32 = arith.constant 0 : i32
    %c0_i32_0 = arith.constant 0 : i32
    return %c0_i32, %arg1 : i32, i32
  }
  func.func @transform_3(%arg0: i32, %arg1: i32) -> (i32, i32) {
    %c0_i32 = arith.constant 0 : i32
    return %arg0, %arg1 : i32, i32
  }
  func.func @transform_4(%arg0: i32, %arg1: i32) -> (i32, i32, i32) {
    %c0_i32 = arith.constant 0 : i32
    %c0_i32_0 = arith.constant 0 : i32
    return %arg0, %c0_i32, %arg1 : i32, i32, i32
  }
}

</mosaic_0001>

<bundles_post_ra>
// kernel: tpu_custom_call.1
= control target key start
LH: loop header
LB: loop body
LE: loop exit
PB: predicated region body
PF: predicated region fallthrough
CT: control target
= control target key end

     0   :  { %10 = vsyncpa [#allocation3], 0  ;;  %s2207_s0 = inlined_call_operand.hbm [shape: bf16[512,128], index: 0, kind: input, shape index: {}]   ;;  %s2208_s1 = inlined_call_operand.hbm [shape: bf16[128,128], index: 1, kind: input, shape index: {}]   ;;  %s2209_s2 = inlined_call_operand.vmem [shape: f32[1,128], index: 2, kind: input, shape index: {}]   ;;  %s2210_s3 = inlined_call_operand.hbm [shape: bf16[512,128], index: 3, kind: output, shape index: {0}]   ;;  %s2211_s4 = inlined_call_operand.hbm [shape: f32[1,2,128], index: 4, kind: output, shape index: {1}]  }
   0x1   :  { %11 = vsyncpa [#allocation6], 0 }
   0x2   :  { %12 = vsyncpa [#allocation4], 0 }
   0x3   :  { %13 = vsyncpa [#allocation9], 0  ;;  %s1858_s15 = smov [#allocation2]   ;;  %s1762_s19 = scalar_lea.hbm %s2207_s0, 4096 }
   0x4   :  { %s19_s16 = sshll.u32 %s1858_s15, 4  ;;  %p1763_p0 = scmp.ne.s32.totalorder %s2207_s0, %s1762_s19  ;;  %s20_s16 = int_to_ptr.vmem [resolvable:$true] %s19_s16 }
   0x5   :  { %p1766_p1 = scmp.lt.u32.totalorder %s1762_s19, %s2207_s0 }
   0x7   :  { %p1768_p2 = pnand %p1766_p1, %p1763_p0 }
   0x9   :  { %1771 = shalt.err (!%p1768_p2)
}
   0xa   :  { %s1772_s24 = scalar_lea.vmem %s20_s16, 4096  ;;  %p1777_p4 = scmp.lt.s32.totalorder %s20_s16, %s20_s16 }
   0xb   :  { %p1773_p3 = scmp.ne.s32.totalorder %s20_s16, %s1772_s24  ;;  %p1778_p5 = scmp.lt.s32.totalorder %s1772_s24, %s1772_s24 }
   0xd   :  { %p1779_p6 = por %p1778_p5, %p1777_p4 }
   0xf   :  { %p1780_p7 = pnand %p1779_p6, %p1773_p3 }
  0x11   :  { %1783 = shalt.err (!%p1780_p7)
}
  0x12   :  { %s1859_s25 = smov 64   ;;  %s1860_s26 = smov 4  }
  0x13   :  { %25 = dma.hbm_to_vmem [thread:$0]  %s2207_s0, 4096, %s20_s16, [#allocation3], %s1859_s25, %s1859_s25, %s1860_s26  }
  0x14   :  { %s1861_s29 = smov [#allocation5]   ;;  %s1784_s7 = scalar_lea.hbm %s2208_s1, 1024 }
  0x15   :  { %s31_s30 = sshll.u32 %s1861_s29, 4  ;;  %p1785_p8 = scmp.ne.s32.totalorder %s2208_s1, %s1784_s7  ;;  %s32_s30 = int_to_ptr.vmem [resolvable:$true] %s31_s30 }
  0x16   :  { %p1788_p9 = scmp.lt.u32.totalorder %s1784_s7, %s2208_s1 }
  0x18   :  { %p1790_p10 = pnand %p1788_p9, %p1785_p8 }
  0x1a   :  { %1793 = shalt.err (!%p1790_p10)
}
  0x1b   :  { %s1794_s12 = scalar_lea.vmem %s32_s30, 1024  ;;  %p1799_p12 = scmp.lt.s32.totalorder %s32_s30, %s32_s30 }
  0x1c   :  { %p1795_p11 = scmp.ne.s32.totalorder %s32_s30, %s1794_s12  ;;  %p1800_p13 = scmp.lt.s32.totalorder %s1794_s12, %s1794_s12 }
  0x1e   :  { %p1801_p0 = por %p1800_p13, %p1799_p12 }
  0x20   :  { %p1802_p1 = pnand %p1801_p0, %p1795_p11 }
  0x22   :  { %1805 = shalt.err (!%p1802_p1)
}
  0x23   :  { %37 = dma.hbm_to_vmem [thread:$0]  %s2208_s1, 1024, %s32_s30, [#allocation6], %s1859_s25, %s1859_s25, %s1860_s26  }
  0x24   :  { %1850 = dma.done.wait [#allocation3], 4096  }
  0x25   :  { %1851 = vsyncadd [#allocation3], 4294963200 }
  0x26   :  { %1852 = dma.done.wait [#allocation6], 1024  }
  0x27   :  { %1853 = vsyncadd [#allocation6], 4294966272  ;;  %v1722_v0 = vld [vmem:[#allocation5] sm:$0xff]   ;;  %v1723_v1 = vld [vmem:[#allocation5 + $0x8] sm:$0xff]  }
  0x28   :  { %1620 = vmatprep.subr.bf16.mxu0 %v1722_v0  ;;  %1700 = vmatprep.subr.bf16.mxu1 %v1722_v0  ;;  %v1724_v2 = vld [vmem:[#allocation5 + $0x10] sm:$0xff]   ;;  %v1725_v3 = vld [vmem:[#allocation5 + $0x18] sm:$0xff]   ;;  %v1730_v4 = vld [vmem:[#allocation2] sm:$0xff]  }
  0x29   :  { %1621 = vmatpush3.bf16.msra.mxu0 %v1722_v0  ;;  %1708 = vmatpush3.bf16.msra.mxu1 %v1722_v0  ;;  %v1726_v5 = vld [vmem:[#allocation5 + $0x20] sm:$0xff]   ;;  %v1727_v6 = vld [vmem:[#allocation5 + $0x28] sm:$0xff]   ;;  %v1728_v7 = vld [vmem:[#allocation5 + $0x30] sm:$0xff]  }
  0x2a   :  { %1622 = vmatprep.subr.bf16.mxu0 %v1723_v1  ;;  %1701 = vmatprep.subr.bf16.mxu1 %v1723_v1  ;;  %v1729_v8 = vld [vmem:[#allocation5 + $0x38] sm:$0xff]   ;;  %v1746_v9 = vld [vmem:[#allocation2 + $0x80] sm:$0xff]   ;;  %v1731_v10 = vld [vmem:[#allocation2 + $0x8] sm:$0xff]  }
  0x2b   :  { %1636 = vmatprep.mubr.bf16.mxu0 %v1730_v4  ;;  %1668 = vmatprep.mubr.bf16.mxu1 %v1746_v9  ;;  %v1732_v11 = vld [vmem:[#allocation2 + $0x10] sm:$0xff]   ;;  %v1747_v12 = vld [vmem:[#allocation2 + $0x88] sm:$0xff]   ;;  %v1733_v14 = vld [vmem:[#allocation2 + $0x18] sm:$0xff]  }
  0x2c   :  { %v1748_v13 = vld [vmem:[#allocation2 + $0x90] sm:$0xff]   ;;  %v1734_v15 = vld [vmem:[#allocation2 + $0x20] sm:$0xff]   ;;  %v1749_v16 = vld [vmem:[#allocation2 + $0x98] sm:$0xff]  }
  0x2d   :  { %1623 = vmatpush3.bf16.msra.mxu0 %v1723_v1  ;;  %1709 = vmatpush3.bf16.msra.mxu1 %v1723_v1  ;;  %v1750_v17 = vld [vmem:[#allocation2 + $0xa0] sm:$0xff]   ;;  %v1735_v18 = vld [vmem:[#allocation2 + $0x28] sm:$0xff]   ;;  %v1736_v20 = vld [vmem:[#allocation2 + $0x30] sm:$0xff]  }
  0x2e   :  { %1624 = vmatprep.subr.bf16.mxu0 %v1724_v2  ;;  %1702 = vmatprep.subr.bf16.mxu1 %v1724_v2  ;;  %v1751_v19 = vld [vmem:[#allocation2 + $0xa8] sm:$0xff]   ;;  %v1752_v21 = vld [vmem:[#allocation2 + $0xb0] sm:$0xff]   ;;  %v1737_v22 = vld [vmem:[#allocation2 + $0x38] sm:$0xff]  }
  0x2f   :  { %v1753_v23 = vld [vmem:[#allocation2 + $0xb8] sm:$0xff]   ;;  %v1738_v24 = vld [vmem:[#allocation2 + $0x40] sm:$0xff]   ;;  %v1739_v26 = vld [vmem:[#allocation2 + $0x48] sm:$0xff]  }
  0x30   :  { %v1754_v25 = vld [vmem:[#allocation2 + $0xc0] sm:$0xff]   ;;  %v1755_v27 = vld [vmem:[#allocation2 + $0xc8] sm:$0xff]   ;;  %v1740_v28 = vld [vmem:[#allocation2 + $0x50] sm:$0xff]  }
  0x31   :  { %1625 = vmatpush3.bf16.msra.mxu0 %v1724_v2  ;;  %1710 = vmatpush3.bf16.msra.mxu1 %v1724_v2  ;;  %v1756_v29 = vld [vmem:[#allocation2 + $0xd0] sm:$0xff]   ;;  %v1741_v30 = vld [vmem:[#allocation2 + $0x58] sm:$0xff]   ;;  %v1742_v32 = vld [vmem:[#allocation2 + $0x60] sm:$0xff]  }
  0x32   :  { %1626 = vmatprep.subr.bf16.mxu0 %v1725_v3  ;;  %1703 = vmatprep.subr.bf16.mxu1 %v1725_v3  ;;  %v1757_v31 = vld [vmem:[#allocation2 + $0xd8] sm:$0xff]   ;;  %v1758_v33 = vld [vmem:[#allocation2 + $0xe0] sm:$0xff]   ;;  %v1743_v34 = vld [vmem:[#allocation2 + $0x68] sm:$0xff]  }
  0x33   :  { %v1759_v35 = vld [vmem:[#allocation2 + $0xe8] sm:$0xff]   ;;  %v1744_v36 = vld [vmem:[#allocation2 + $0x70] sm:$0xff]   ;;  %v1745_v38 = vld [vmem:[#allocation2 + $0x78] sm:$0xff]  }
  0x34   :  { %v1760_v37 = vld [vmem:[#allocation2 + $0xf0] sm:$0xff]   ;;  %v1761_v39 = vld [vmem:[#allocation2 + $0xf8] sm:$0xff]   ;;  %v1922_v40 = vld [vmem:[%s2209_s2] ss:$0 sm:$0xff]  ;;  %s1862_s2 = smov [#allocation7]  }
  0x35   :  { %1627 = vmatpush3.bf16.msra.mxu0 %v1725_v3  ;;  %1711 = vmatpush3.bf16.msra.mxu1 %v1725_v3  ;;  %s1193_s15 = sshll.u32 %s1862_s2, 4  ;;  %s1194_s15 = int_to_ptr.vmem [resolvable:$true] %s1193_s15 }
  0x36   :  { %1628 = vmatprep.subr.bf16.mxu0 %v1726_v5  ;;  %1704 = vmatprep.subr.bf16.mxu1 %v1726_v5  ;;  %s1806_s16 = scalar_lea.vmem %s1194_s15, 4096  ;;  %p1811_p3 = scmp.lt.s32.totalorder %s1194_s15, %s1194_s15 }
  0x37   :  { %p1807_p2 = scmp.ne.s32.totalorder %s1194_s15, %s1806_s16  ;;  %p1812_p4 = scmp.lt.s32.totalorder %s1806_s16, %s1806_s16 }
  0x39   :  { %1629 = vmatpush3.bf16.msra.mxu0 %v1726_v5  ;;  %1712 = vmatpush3.bf16.msra.mxu1 %v1726_v5  ;;  %p1813_p5 = por %p1812_p4, %p1811_p3 }
  0x3a   :  { %1630 = vmatprep.subr.bf16.mxu0 %v1727_v6  ;;  %1705 = vmatprep.subr.bf16.mxu1 %v1727_v6 }
  0x3b   :  { %p1814_p6 = pnand %p1813_p5, %p1807_p2 }
  0x3d   :  { %1631 = vmatpush3.bf16.msra.mxu0 %v1727_v6  ;;  %1713 = vmatpush3.bf16.msra.mxu1 %v1727_v6 }
  0x3e   :  { %1632 = vmatprep.subr.bf16.mxu0 %v1728_v7  ;;  %1706 = vmatprep.subr.bf16.mxu1 %v1728_v7 }
  0x41   :  { %1633 = vmatpush3.bf16.msra.mxu0 %v1728_v7  ;;  %1714 = vmatpush3.bf16.msra.mxu1 %v1728_v7 }
  0x42   :  { %1634 = vmatprep.subr.bf16.mxu0 %v1729_v8  ;;  %1707 = vmatprep.subr.bf16.mxu1 %v1729_v8 }
  0x45   :  { %1635 = vmatpush3.bf16.msra.mxu0 %v1729_v8  ;;  %1715 = vmatpush3.bf16.msra.mxu1 %v1729_v8 }
  0x48   :  { %1637 = vmatmul.mubr.bf16.vlgmr.msra.gmra.mrb[0].mxu0 %v1731_v10  ;;  %1669 = vmatmul.mubr.bf16.vlgmr.msra.gmra.mrb[0].mxu1 %v1747_v12 }
  0x49   :  { %1640 = vmatprep.mubr.bf16.mxu0 %v1732_v11  ;;  %1672 = vmatprep.mubr.bf16.mxu1 %v1748_v13 }
  0x50   :  { %1641 = vmatmul.mubr.bf16.gmra.mrb[4].mxu0 %v1733_v14  ;;  %1673 = vmatmul.mubr.bf16.gmra.mrb[4].mxu1 %v1749_v16 }
  0x51   :  { %1644 = vmatprep.mubr.bf16.mxu0 %v1734_v15  ;;  %1676 = vmatprep.mubr.bf16.mxu1 %v1750_v17 }
  0x58   :  { %1645 = vmatmul.mubr.bf16.gmra.mrb[8].mxu0 %v1735_v18  ;;  %1677 = vmatmul.mubr.bf16.gmra.mrb[8].mxu1 %v1751_v19 }
  0x59   :  { %1648 = vmatprep.mubr.bf16.mxu0 %v1736_v20  ;;  %1680 = vmatprep.mubr.bf16.mxu1 %v1752_v21 }
  0x60   :  { %1649 = vmatmul.mubr.bf16.gmra.mrb[12].mxu0 %v1737_v22  ;;  %1681 = vmatmul.mubr.bf16.gmra.mrb[12].mxu1 %v1753_v23 }
  0x61   :  { %1652 = vmatprep.mubr.bf16.mxu0 %v1738_v24  ;;  %1684 = vmatprep.mubr.bf16.mxu1 %v1754_v25 }
  0x68   :  { %1653 = vmatmul.mubr.bf16.gmra.mrb[16].mxu0 %v1739_v26  ;;  %1685 = vmatmul.mubr.bf16.gmra.mrb[16].mxu1 %v1755_v27 }
  0x69   :  { %1656 = vmatprep.mubr.bf16.mxu0 %v1740_v28  ;;  %1688 = vmatprep.mubr.bf16.mxu1 %v1756_v29 }
  0x70   :  { %1657 = vmatmul.mubr.bf16.gmra.mrb[20].mxu0 %v1741_v30  ;;  %1689 = vmatmul.mubr.bf16.gmra.mrb[20].mxu1 %v1757_v31 }
  0x71   :  { %1660 = vmatprep.mubr.bf16.mxu0 %v1742_v32  ;;  %1692 = vmatprep.mubr.bf16.mxu1 %v1758_v33 }
  0x78   :  { %1661 = vmatmul.mubr.bf16.gmra.mrb[24].mxu0 %v1743_v34  ;;  %1693 = vmatmul.mubr.bf16.gmra.mrb[24].mxu1 %v1759_v35 }
  0x79   :  { %1664 = vmatprep.mubr.bf16.mxu0 %v1744_v36  ;;  %1696 = vmatprep.mubr.bf16.mxu1 %v1760_v37 }
  0x80   :  { %1665 = vmatmul.mubr.bf16.gmra.mrb[28].mxu0 %v1745_v38  ;;  %1697 = vmatmul.mubr.bf16.gmra.mrb[28].mxu1 %v1761_v39 }
 0x11b   :  { %v1638_v41 = vpop.f32.mrb[0].mxu0  ;;  %v1670_v42 = vpop.f32.mrb[0].mxu1 }
 0x11c   :  { %v408_v43 = vpop.f32.mrb[1].mxu0  ;;  %v1925_v44 = vadd.f32 %v1670_v42, %v1922_v40  ;;  %v536_v45 = vpop.f32.mrb[1].mxu1  ;;  %v417_v50 = vadd.f32 %v1638_v41, %v1922_v40 }
 0x11d   :  { %v409_v46 = vadd.f32 %v1922_v40, %v408_v43  ;;  %v1639_v47 = vpop.f32.mrb[2].mxu0  ;;  %v1929_v48 = vadd.f32 %v1922_v40, %v536_v45  ;;  %v1671_v49 = vpop.f32.mrb[2].mxu1 }
 0x11e   :  { %v420_v51 = vadd.f32 %v1639_v47, %v1922_v40  ;;  %v411_v52 = vpop.f32.mrb[3].mxu0  ;;  %v1934_v53 = vadd.f32 %v1671_v49, %v1922_v40  ;;  %v539_v54 = vpop.f32.mrb[3].mxu1  ;;  %v1054_v0 = vmul.f32 %v417_v50, %v417_v50 }
 0x11f   :  { %v412_v55 = vadd.f32 %v1922_v40, %v411_v52  ;;  %v1938_v56 = vadd.f32 %v1922_v40, %v539_v54  ;;  %v1052_v57 = vmul.f32 %v409_v46, %v409_v46 }
 0x120   :  { %v1397_v58 = vpack.c.bf16 %v420_v51, %v417_v50  ;;  %v1477_v59 = vpack.c.bf16 %v1934_v53, %v1925_v44  ;;  %v1055_v8 = vmul.f32 %v420_v51, %v420_v51 }
 0x121   :  { %v1392_v60 = vpack.c.bf16 %v412_v55, %v409_v46  ;;  %v983_v61 = vadd.f32 %v412_v55, %v409_v46  ;;  %v1053_v62 = vmul.f32 %v412_v55, %v412_v55  ;;  %v1472_v63 = vpack.c.bf16 %v1938_v56, %v1929_v48 }
 0x122   :  { %1549 = vst [vmem:[#allocation7 + $0x8] sm:$0xff] %v1397_v58   ;;  %1565 = vst [vmem:[#allocation7 + $0x88] sm:$0xff] %v1477_v59  }
 0x123   :  { %1393 = vst [vmem:[#allocation7] sm:$0xff] %v1392_v60   ;;  %v984_v1 = vadd.f32 %v983_v61, %v417_v50  ;;  %v1116_v2 = vadd.f32 %v1053_v62, %v1052_v57  ;;  %v1642_v3 = vpop.f32.mrb[4].mxu0  ;;  %1564 = vst [vmem:[#allocation7 + $0x80] sm:$0xff] %v1472_v63   ;;  %v1674_v4 = vpop.f32.mrb[4].mxu1 }
 0x124   :  { %v424_v5 = vpop.f32.mrb[5].mxu0  ;;  %v1945_v6 = vadd.f32 %v1674_v4, %v1922_v40  ;;  %v552_v7 = vpop.f32.mrb[5].mxu1  ;;  %v433_v14 = vadd.f32 %v1642_v3, %v1922_v40 }
 0x125   :  { %v1117_v9 = vadd.f32 %v1116_v2, %v1054_v0  ;;  %v425_v10 = vadd.f32 %v1922_v40, %v424_v5  ;;  %v985_v11 = vadd.f32 %v984_v1, %v420_v51  ;;  %v1643_v12 = vpop.f32.mrb[6].mxu0  ;;  %v1675_v13 = vpop.f32.mrb[6].mxu1  ;;  %v1955_v24 = vadd.f32 %v1922_v40, %v552_v7 }
 0x126   :  { %v436_v15 = vadd.f32 %v1643_v12, %v1922_v40  ;;  %v427_v16 = vpop.f32.mrb[7].mxu0  ;;  %v1951_v17 = vadd.f32 %v1675_v13, %v1922_v40  ;;  %v555_v18 = vpop.f32.mrb[7].mxu1  ;;  %v1058_v31 = vmul.f32 %v433_v14, %v433_v14 }
 0x127   :  { %v986_v19 = vadd.f32 %v985_v11, %v425_v10  ;;  %v1056_v20 = vmul.f32 %v425_v10, %v425_v10  ;;  %v1118_v21 = vadd.f32 %v1117_v9, %v1055_v8  ;;  %v428_v22 = vadd.f32 %v1922_v40, %v427_v16 }
 0x128   :  { %v1407_v23 = vpack.c.bf16 %v436_v15, %v433_v14  ;;  %v1487_v25 = vpack.c.bf16 %v1951_v17, %v1945_v6  ;;  %v1960_v30 = vadd.f32 %v1922_v40, %v555_v18  ;;  %v1059_v41 = vmul.f32 %v436_v15, %v436_v15 }
 0x129   :  { %v1119_v26 = vadd.f32 %v1118_v21, %v1056_v20  ;;  %v1402_v27 = vpack.c.bf16 %v428_v22, %v425_v10  ;;  %v987_v28 = vadd.f32 %v986_v19, %v428_v22  ;;  %v1057_v29 = vmul.f32 %v428_v22, %v428_v22 }
 0x12a   :  { %1551 = vst [vmem:[#allocation7 + $0x18] sm:$0xff] %v1407_v23   ;;  %1567 = vst [vmem:[#allocation7 + $0x98] sm:$0xff] %v1487_v25   ;;  %v1482_v37 = vpack.c.bf16 %v1960_v30, %v1955_v24 }
 0x12b   :  { %1550 = vst [vmem:[#allocation7 + $0x10] sm:$0xff] %v1402_v27   ;;  %v988_v32 = vadd.f32 %v987_v28, %v433_v14  ;;  %v1120_v33 = vadd.f32 %v1119_v26, %v1057_v29  ;;  %v1646_v34 = vpop.f32.mrb[8].mxu0  ;;  %v1678_v35 = vpop.f32.mrb[8].mxu1 }
 0x12c   :  { %v440_v36 = vpop.f32.mrb[9].mxu0  ;;  %v1965_v38 = vadd.f32 %v1678_v35, %v1922_v40  ;;  %v568_v39 = vpop.f32.mrb[9].mxu1  ;;  %v449_v49 = vadd.f32 %v1646_v34, %v1922_v40  ;;  %1566 = vst [vmem:[#allocation7 + $0x90] sm:$0xff] %v1482_v37  }
 0x12d   :  { %v1121_v42 = vadd.f32 %v1120_v33, %v1058_v31  ;;  %v441_v43 = vadd.f32 %v1922_v40, %v440_v36  ;;  %v989_v45 = vadd.f32 %v988_v32, %v436_v15  ;;  %v1647_v46 = vpop.f32.mrb[10].mxu0  ;;  %v1679_v47 = vpop.f32.mrb[10].mxu1  ;;  %v1975_v61 = vadd.f32 %v1922_v40, %v568_v39 }
 0x12e   :  { %v452_v50 = vadd.f32 %v1647_v46, %v1922_v40  ;;  %v443_v51 = vpop.f32.mrb[11].mxu0  ;;  %v1971_v52 = vadd.f32 %v1679_v47, %v1922_v40  ;;  %v571_v54 = vpop.f32.mrb[11].mxu1  ;;  %v1062_v4 = vmul.f32 %v449_v49, %v449_v49 }
 0x12f   :  { %v990_v55 = vadd.f32 %v989_v45, %v441_v43  ;;  %v1060_v57 = vmul.f32 %v441_v43, %v441_v43  ;;  %v1122_v58 = vadd.f32 %v1121_v42, %v1059_v41  ;;  %v444_v59 = vadd.f32 %v1922_v40, %v443_v51 }
 0x130   :  { %v1417_v60 = vpack.c.bf16 %v452_v50, %v449_v49  ;;  %v1497_v62 = vpack.c.bf16 %v1971_v52, %v1965_v38  ;;  %v1980_v3 = vadd.f32 %v1922_v40, %v571_v54  ;;  %v1063_v14 = vmul.f32 %v452_v50, %v452_v50 }
 0x131   :  { %v1123_v63 = vadd.f32 %v1122_v58, %v1060_v57  ;;  %v1412_v0 = vpack.c.bf16 %v444_v59, %v441_v43  ;;  %v991_v1 = vadd.f32 %v990_v55, %v444_v59  ;;  %v1061_v2 = vmul.f32 %v444_v59, %v444_v59 }
 0x132   :  { %1553 = vst [vmem:[#allocation7 + $0x28] sm:$0xff] %v1417_v60   ;;  %1569 = vst [vmem:[#allocation7 + $0xa8] sm:$0xff] %v1497_v62   ;;  %v1492_v11 = vpack.c.bf16 %v1980_v3, %v1975_v61 }
 0x133   :  { %1552 = vst [vmem:[#allocation7 + $0x20] sm:$0xff] %v1412_v0   ;;  %v992_v5 = vadd.f32 %v991_v1, %v449_v49  ;;  %v1124_v7 = vadd.f32 %v1123_v63, %v1061_v2  ;;  %v1650_v8 = vpop.f32.mrb[12].mxu0  ;;  %v1682_v9 = vpop.f32.mrb[12].mxu1 }
 0x134   :  { %v456_v10 = vpop.f32.mrb[13].mxu0  ;;  %v1985_v12 = vadd.f32 %v1682_v9, %v1922_v40  ;;  %v584_v13 = vpop.f32.mrb[13].mxu1  ;;  %v465_v21 = vadd.f32 %v1650_v8, %v1922_v40  ;;  %1568 = vst [vmem:[#allocation7 + $0xa0] sm:$0xff] %v1492_v11  }
 0x135   :  { %v1125_v15 = vadd.f32 %v1124_v7, %v1062_v4  ;;  %v457_v16 = vadd.f32 %v1922_v40, %v456_v10  ;;  %v993_v18 = vadd.f32 %v992_v5, %v452_v50  ;;  %v1651_v19 = vpop.f32.mrb[14].mxu0  ;;  %v1683_v20 = vpop.f32.mrb[14].mxu1  ;;  %v1995_v33 = vadd.f32 %v1922_v40, %v584_v13 }
 0x136   :  { %v468_v22 = vadd.f32 %v1651_v19, %v1922_v40  ;;  %v459_v23 = vpop.f32.mrb[15].mxu0  ;;  %v1991_v25 = vadd.f32 %v1683_v20, %v1922_v40  ;;  %v587_v26 = vpop.f32.mrb[15].mxu1  ;;  %v1066_v42 = vmul.f32 %v465_v21, %v465_v21 }
 0x137   :  { %v994_v27 = vadd.f32 %v993_v18, %v457_v16  ;;  %v1064_v28 = vmul.f32 %v457_v16, %v457_v16  ;;  %v1126_v29 = vadd.f32 %v1125_v15, %v1063_v14  ;;  %v460_v31 = vadd.f32 %v1922_v40, %v459_v23 }
 0x138   :  { %v1427_v32 = vpack.c.bf16 %v468_v22, %v465_v21  ;;  %v1507_v34 = vpack.c.bf16 %v1991_v25, %v1985_v12  ;;  %v2000_v41 = vadd.f32 %v1922_v40, %v587_v26  ;;  %v1067_v55 = vmul.f32 %v468_v22, %v468_v22 }
 0x139   :  { %v1127_v35 = vadd.f32 %v1126_v29, %v1064_v28  ;;  %v1422_v36 = vpack.c.bf16 %v460_v31, %v457_v16  ;;  %v995_v37 = vadd.f32 %v994_v27, %v460_v31  ;;  %v1065_v39 = vmul.f32 %v460_v31, %v460_v31 }
 0x13a   :  { %1555 = vst [vmem:[#allocation7 + $0x38] sm:$0xff] %v1427_v32   ;;  %1571 = vst [vmem:[#allocation7 + $0xb8] sm:$0xff] %v1507_v34   ;;  %v1502_v50 = vpack.c.bf16 %v2000_v41, %v1995_v33 }
 0x13b   :  { %1554 = vst [vmem:[#allocation7 + $0x30] sm:$0xff] %v1422_v36   ;;  %v996_v43 = vadd.f32 %v995_v37, %v465_v21  ;;  %v1128_v45 = vadd.f32 %v1127_v35, %v1065_v39  ;;  %v1654_v46 = vpop.f32.mrb[16].mxu0  ;;  %v1686_v47 = vpop.f32.mrb[16].mxu1 }
 0x13c   :  { %v472_v49 = vpop.f32.mrb[17].mxu0  ;;  %v2005_v51 = vadd.f32 %v1686_v47, %v1922_v40  ;;  %v600_v54 = vpop.f32.mrb[17].mxu1  ;;  %v481_v63 = vadd.f32 %v1654_v46, %v1922_v40  ;;  %1570 = vst [vmem:[#allocation7 + $0xb0] sm:$0xff] %v1502_v50  }
 0x13d   :  { %v1129_v57 = vadd.f32 %v1128_v45, %v1066_v42  ;;  %v473_v58 = vadd.f32 %v1922_v40, %v472_v49  ;;  %v997_v59 = vadd.f32 %v996_v43, %v468_v22  ;;  %v1655_v60 = vpop.f32.mrb[18].mxu0  ;;  %v1687_v62 = vpop.f32.mrb[18].mxu1  ;;  %v2015_v11 = vadd.f32 %v1922_v40, %v600_v54 }
 0x13e   :  { %v484_v0 = vadd.f32 %v1655_v60, %v1922_v40  ;;  %v475_v1 = vpop.f32.mrb[19].mxu0  ;;  %v2011_v2 = vadd.f32 %v1687_v62, %v1922_v40  ;;  %v603_v4 = vpop.f32.mrb[19].mxu1  ;;  %v1070_v20 = vmul.f32 %v481_v63, %v481_v63 }
 0x13f   :  { %v998_v5 = vadd.f32 %v997_v59, %v473_v58  ;;  %v1068_v7 = vmul.f32 %v473_v58, %v473_v58  ;;  %v1130_v8 = vadd.f32 %v1129_v57, %v1067_v55  ;;  %v476_v9 = vadd.f32 %v1922_v40, %v475_v1 }
 0x140   :  { %v1437_v10 = vpack.c.bf16 %v484_v0, %v481_v63  ;;  %v1517_v13 = vpack.c.bf16 %v2011_v2, %v2005_v51  ;;  %v2020_v19 = vadd.f32 %v1922_v40, %v603_v4  ;;  %v1071_v32 = vmul.f32 %v484_v0, %v484_v0 }
 0x141   :  { %v1131_v14 = vadd.f32 %v1130_v8, %v1068_v7  ;;  %v1432_v15 = vpack.c.bf16 %v476_v9, %v473_v58  ;;  %v999_v16 = vadd.f32 %v998_v5, %v476_v9  ;;  %v1069_v18 = vmul.f32 %v476_v9, %v476_v9 }
 0x142   :  { %1557 = vst [vmem:[#allocation7 + $0x48] sm:$0xff] %v1437_v10   ;;  %1573 = vst [vmem:[#allocation7 + $0xc8] sm:$0xff] %v1517_v13   ;;  %v1512_v28 = vpack.c.bf16 %v2020_v19, %v2015_v11 }
 0x143   :  { %1556 = vst [vmem:[#allocation7 + $0x40] sm:$0xff] %v1432_v15   ;;  %v1000_v21 = vadd.f32 %v999_v16, %v481_v63  ;;  %v1132_v22 = vadd.f32 %v1131_v14, %v1069_v18  ;;  %v1658_v23 = vpop.f32.mrb[20].mxu0  ;;  %v1690_v26 = vpop.f32.mrb[20].mxu1 }
 0x144   :  { %v488_v27 = vpop.f32.mrb[21].mxu0  ;;  %v2025_v29 = vadd.f32 %v1690_v26, %v1922_v40  ;;  %v616_v31 = vpop.f32.mrb[21].mxu1  ;;  %v497_v42 = vadd.f32 %v1658_v23, %v1922_v40  ;;  %1572 = vst [vmem:[#allocation7 + $0xc0] sm:$0xff] %v1512_v28  }
 0x145   :  { %v1133_v34 = vadd.f32 %v1132_v22, %v1070_v20  ;;  %v489_v35 = vadd.f32 %v1922_v40, %v488_v27  ;;  %v1001_v36 = vadd.f32 %v1000_v21, %v484_v0  ;;  %v1659_v37 = vpop.f32.mrb[22].mxu0  ;;  %v1691_v39 = vpop.f32.mrb[22].mxu1  ;;  %v2035_v58 = vadd.f32 %v1922_v40, %v616_v31 }
 0x146   :  { %v500_v43 = vadd.f32 %v1659_v37, %v1922_v40  ;;  %v491_v45 = vpop.f32.mrb[23].mxu0  ;;  %v2031_v46 = vadd.f32 %v1691_v39, %v1922_v40  ;;  %v619_v47 = vpop.f32.mrb[23].mxu1  ;;  %v1074_v4 = vmul.f32 %v497_v42, %v497_v42 }
 0x147   :  { %v1002_v49 = vadd.f32 %v1001_v36, %v489_v35  ;;  %v1072_v50 = vmul.f32 %v489_v35, %v489_v35  ;;  %v1134_v54 = vadd.f32 %v1133_v34, %v1071_v32  ;;  %v492_v55 = vadd.f32 %v1922_v40, %v491_v45 }
 0x148   :  { %v1447_v57 = vpack.c.bf16 %v500_v43, %v497_v42  ;;  %v1527_v59 = vpack.c.bf16 %v2031_v46, %v2025_v29  ;;  %v2040_v1 = vadd.f32 %v1922_v40, %v619_v47  ;;  %v1075_v16 = vmul.f32 %v500_v43, %v500_v43 }
 0x149   :  { %v1135_v60 = vadd.f32 %v1134_v54, %v1072_v50  ;;  %v1442_v62 = vpack.c.bf16 %v492_v55, %v489_v35  ;;  %v1003_v63 = vadd.f32 %v1002_v49, %v492_v55  ;;  %v1073_v0 = vmul.f32 %v492_v55, %v492_v55 }
 0x14a   :  { %1559 = vst [vmem:[#allocation7 + $0x58] sm:$0xff] %v1447_v57   ;;  %1575 = vst [vmem:[#allocation7 + $0xd8] sm:$0xff] %v1527_v59   ;;  %v1522_v13 = vpack.c.bf16 %v2040_v1, %v2035_v58 }
 0x14b   :  { %1558 = vst [vmem:[#allocation7 + $0x50] sm:$0xff] %v1442_v62   ;;  %v1004_v5 = vadd.f32 %v1003_v63, %v497_v42  ;;  %v1136_v7 = vadd.f32 %v1135_v60, %v1073_v0  ;;  %v1662_v8 = vpop.f32.mrb[24].mxu0  ;;  %v1694_v9 = vpop.f32.mrb[24].mxu1 }
 0x14c   :  { %v504_v10 = vpop.f32.mrb[25].mxu0  ;;  %v2045_v14 = vadd.f32 %v1694_v9, %v1922_v40  ;;  %v632_v15 = vpop.f32.mrb[25].mxu1  ;;  %v513_v26 = vadd.f32 %v1662_v8, %v1922_v40  ;;  %1574 = vst [vmem:[#allocation7 + $0xd0] sm:$0xff] %v1522_v13  }
 0x14d   :  { %v1137_v18 = vadd.f32 %v1136_v7, %v1074_v4  ;;  %v505_v20 = vadd.f32 %v1922_v40, %v504_v10  ;;  %v1005_v21 = vadd.f32 %v1004_v5, %v500_v43  ;;  %v1663_v22 = vpop.f32.mrb[26].mxu0  ;;  %v1695_v23 = vpop.f32.mrb[26].mxu1  ;;  %v2055_v42 = vadd.f32 %v1922_v40, %v632_v15 }
 0x14e   :  { %v516_v27 = vadd.f32 %v1663_v22, %v1922_v40  ;;  %v507_v28 = vpop.f32.mrb[27].mxu0  ;;  %v2051_v31 = vadd.f32 %v1695_v23, %v1922_v40  ;;  %v635_v32 = vpop.f32.mrb[27].mxu1  ;;  %v1078_v55 = vmul.f32 %v513_v26, %v513_v26 }
 0x14f   :  { %v1006_v34 = vadd.f32 %v1005_v21, %v505_v20  ;;  %v1076_v35 = vmul.f32 %v505_v20, %v505_v20  ;;  %v1138_v36 = vadd.f32 %v1137_v18, %v1075_v16  ;;  %v508_v37 = vadd.f32 %v1922_v40, %v507_v28 }
 0x150   :  { %v1457_v39 = vpack.c.bf16 %v516_v27, %v513_v26  ;;  %v1537_v43 = vpack.c.bf16 %v2051_v31, %v2045_v14  ;;  %v2060_v54 = vadd.f32 %v1922_v40, %v635_v32  ;;  %v1079_v7 = vmul.f32 %v516_v27, %v516_v27 }
 0x151   :  { %v1139_v45 = vadd.f32 %v1138_v36, %v1076_v35  ;;  %v1452_v47 = vpack.c.bf16 %v508_v37, %v505_v20  ;;  %v1007_v49 = vadd.f32 %v1006_v34, %v508_v37  ;;  %v1077_v50 = vmul.f32 %v508_v37, %v508_v37 }
 0x152   :  { %1561 = vst [vmem:[#allocation7 + $0x68] sm:$0xff] %v1457_v39   ;;  %1577 = vst [vmem:[#allocation7 + $0xe8] sm:$0xff] %v1537_v43   ;;  %v1532_v0 = vpack.c.bf16 %v2060_v54, %v2055_v42 }
 0x153   :  { %1560 = vst [vmem:[#allocation7 + $0x60] sm:$0xff] %v1452_v47   ;;  %v1008_v57 = vadd.f32 %v1007_v49, %v513_v26  ;;  %v1140_v59 = vadd.f32 %v1139_v45, %v1077_v50  ;;  %v1666_v60 = vpop.f32.mrb[28].mxu0  ;;  %v1698_v62 = vpop.f32.mrb[28].mxu1 }
 0x154   :  { %v520_v63 = vpop.f32.mrb[29].mxu0  ;;  %v2065_v4 = vadd.f32 %v1698_v62, %v1922_v40  ;;  %v648_v5 = vpop.f32.mrb[29].mxu1  ;;  %v529_v16 = vadd.f32 %v1666_v60, %v1922_v40  ;;  %1576 = vst [vmem:[#allocation7 + $0xe0] sm:$0xff] %v1532_v0   ;;  %v1084_v62 = vmul.f32 %v1929_v48, %v1929_v48 }
 0x155   :  { %v1141_v8 = vadd.f32 %v1140_v59, %v1078_v55  ;;  %v521_v9 = vadd.f32 %v1922_v40, %v520_v63  ;;  %v1009_v10 = vadd.f32 %v1008_v57, %v516_v27  ;;  %v1667_v13 = vpop.f32.mrb[30].mxu0  ;;  %v1699_v15 = vpop.f32.mrb[30].mxu1  ;;  %v2075_v27 = vadd.f32 %v1922_v40, %v648_v5 }
 0x156   :  { %v532_v18 = vadd.f32 %v1667_v13, %v1922_v40  ;;  %v523_v20 = vpop.f32.mrb[31].mxu0  ;;  %v2071_v21 = vadd.f32 %v1699_v15, %v1922_v40  ;;  %v651_v22 = vpop.f32.mrb[31].mxu1  ;;  %v1082_v47 = vmul.f32 %v529_v16, %v529_v16 }
 0x157   :  { %v1010_v23 = vadd.f32 %v1009_v10, %v521_v9  ;;  %v1080_v26 = vmul.f32 %v521_v9, %v521_v9  ;;  %v1142_v28 = vadd.f32 %v1141_v8, %v1079_v7  ;;  %v524_v32 = vadd.f32 %v1922_v40, %v523_v20 }
 0x158   :  { %v1467_v34 = vpack.c.bf16 %v532_v18, %v529_v16  ;;  %v1547_v35 = vpack.c.bf16 %v2071_v21, %v2065_v4  ;;  %v2080_v45 = vadd.f32 %v1922_v40, %v651_v22  ;;  %v1083_v57 = vmul.f32 %v532_v18, %v532_v18 }
 0x159   :  { %v1143_v36 = vadd.f32 %v1142_v28, %v1080_v26  ;;  %v1462_v37 = vpack.c.bf16 %v524_v32, %v521_v9  ;;  %v1011_v39 = vadd.f32 %v1010_v23, %v524_v32  ;;  %v1081_v43 = vmul.f32 %v524_v32, %v524_v32 }
 0x15a   :  { %1563 = vst [vmem:[#allocation7 + $0x78] sm:$0xff] %v1467_v34   ;;  %1579 = vst [vmem:[#allocation7 + $0xf8] sm:$0xff] %v1547_v35   ;;  %v1542_v55 = vpack.c.bf16 %v2080_v45, %v2075_v27 }
 0x15b   :  { %1562 = vst [vmem:[#allocation7 + $0x70] sm:$0xff] %v1462_v37   ;;  %v1012_v49 = vadd.f32 %v1011_v39, %v529_v16  ;;  %v1144_v50 = vadd.f32 %v1143_v36, %v1081_v43 }
 0x15c   :  { %1578 = vst [vmem:[#allocation7 + $0xf0] sm:$0xff] %v1542_v55  }
 0x15d   :  { %v1145_v59 = vadd.f32 %v1144_v50, %v1082_v47  ;;  %v1013_v60 = vadd.f32 %v1012_v49, %v532_v18 }
 0x15f   :  { %v1014_v63 = vadd.f32 %v1013_v60, %v1929_v48  ;;  %v1146_v0 = vadd.f32 %v1145_v59, %v1083_v57 }
 0x160   :  { %1817 = shalt.err (!%p1814_p6)
}
 0x161   :  { %s1818_s19 = scalar_lea.hbm %s2210_s3, 4096 }
 0x162   :  { %p1819_p7 = scmp.ne.s32.totalorder %s2210_s3, %s1818_s19  ;;  %p1822_p8 = scmp.lt.u32.totalorder %s1818_s19, %s2210_s3 }
 0x164   :  { %p1824_p9 = pnand %p1822_p8, %p1819_p7 }
 0x166   :  { %1827 = shalt.err (!%p1824_p9)
}
 0x167   :  { %1199 = dma.vmem_to_hbm [thread:$0]  %s1194_s15, 4096, %s2210_s3, [#allocation4], %s1859_s25, %s1859_s25, %s1860_s26   ;;  %v1147_v40 = vadd.f32 %v1146_v0, %v1084_v62  ;;  %v1015_v48 = vadd.f32 %v1014_v63, %v1938_v56  ;;  %v1085_v5 = vmul.f32 %v1938_v56, %v1938_v56  ;;  %v1086_v7 = vmul.f32 %v1925_v44, %v1925_v44 }
 0x168   :  { %v1087_v10 = vmul.f32 %v1934_v53, %v1934_v53  ;;  %v1088_v16 = vmul.f32 %v1955_v24, %v1955_v24  ;;  %v1089_v23 = vmul.f32 %v1960_v30, %v1960_v30  ;;  %v1093_v39 = vmul.f32 %v1980_v3, %v1980_v3  ;;  %s1863_s3 = smov [#allocation8]  }
 0x169   :  { %v1016_v8 = vadd.f32 %v1015_v48, %v1925_v44  ;;  %v1148_v9 = vadd.f32 %v1147_v40, %v1085_v5  ;;  %v1090_v44 = vmul.f32 %v1945_v6, %v1945_v6  ;;  %v1097_v60 = vmul.f32 %v2000_v41, %v2000_v41  ;;  %s1206_s25 = sshll.u32 %s1863_s3, 4  ;;  %s1207_s25 = int_to_ptr.vmem [resolvable:$true] %s1206_s25 }
 0x16a   :  { %vm1185_vm0 = vcmask 1040384   ;;  %s1828_s26 = scalar_lea.vmem %s1207_s25, 32  ;;  %p1833_p11 = scmp.lt.s32.totalorder %s1207_s25, %s1207_s25 }
 0x16b   :  { %v1149_v13 = vadd.f32 %v1148_v9, %v1086_v7  ;;  %v1017_v15 = vadd.f32 %v1016_v8, %v1934_v53  ;;  %v1091_v53 = vmul.f32 %v1951_v17, %v1951_v17  ;;  %v1101_v8 = vmul.f32 %v2020_v19, %v2020_v19  ;;  %p1829_p10 = scmp.ne.s32.totalorder %s1207_s25, %s1828_s26  ;;  %p1834_p12 = scmp.lt.s32.totalorder %s1828_s26, %s1828_s26 }
 0x16d   :  { %v1018_v18 = vadd.f32 %v1017_v15, %v1955_v24  ;;  %v1150_v20 = vadd.f32 %v1149_v13, %v1087_v10  ;;  %v1092_v24 = vmul.f32 %v1975_v61, %v1975_v61  ;;  %p1835_p13 = por %p1834_p12, %p1833_p11 }
 0x16f   :  { %v1151_v22 = vadd.f32 %v1150_v20, %v1088_v16  ;;  %v1019_v56 = vadd.f32 %v1018_v18, %v1960_v30  ;;  %p1836_p0 = pnand %p1835_p13, %p1829_p10 }
 0x171   :  { %v1020_v26 = vadd.f32 %v1019_v56, %v1945_v6  ;;  %v1152_v28 = vadd.f32 %v1151_v22, %v1089_v23  ;;  %v1094_v6 = vmul.f32 %v1965_v38, %v1965_v38  ;;  %v1105_v22 = vmul.f32 %v2040_v1, %v2040_v1 }
 0x173   :  { %v1153_v32 = vadd.f32 %v1152_v28, %v1090_v44  ;;  %v1021_v34 = vadd.f32 %v1020_v26, %v1951_v17  ;;  %v1095_v17 = vmul.f32 %v1971_v52, %v1971_v52 }
 0x175   :  { %v1022_v35 = vadd.f32 %v1021_v34, %v1975_v61  ;;  %v1154_v36 = vadd.f32 %v1153_v32, %v1091_v53  ;;  %v1096_v61 = vmul.f32 %v1995_v33, %v1995_v33  ;;  %v1109_v34 = vmul.f32 %v2060_v54, %v2060_v54 }
 0x177   :  { %v1155_v37 = vadd.f32 %v1154_v36, %v1092_v24  ;;  %v1023_v30 = vadd.f32 %v1022_v35, %v1980_v3 }
 0x179   :  { %v1024_v43 = vadd.f32 %v1023_v30, %v1965_v38  ;;  %v1156_v47 = vadd.f32 %v1155_v37, %v1093_v39  ;;  %v1098_v38 = vmul.f32 %v1985_v12, %v1985_v12 }
 0x17b   :  { %v1157_v49 = vadd.f32 %v1156_v47, %v1094_v6  ;;  %v1025_v50 = vadd.f32 %v1024_v43, %v1971_v52  ;;  %v1099_v52 = vmul.f32 %v1991_v25, %v1991_v25  ;;  %v1113_v43 = vmul.f32 %v2080_v45, %v2080_v45 }
 0x17d   :  { %v1026_v55 = vadd.f32 %v1025_v50, %v1995_v33  ;;  %v1158_v57 = vadd.f32 %v1157_v49, %v1095_v17  ;;  %v1100_v33 = vmul.f32 %v2015_v11, %v2015_v11 }
 0x17f   :  { %v1159_v59 = vadd.f32 %v1158_v57, %v1096_v61  ;;  %v1027_v3 = vadd.f32 %v1026_v55, %v2000_v41 }
 0x181   :  { %v1028_v62 = vadd.f32 %v1027_v3, %v1985_v12  ;;  %v1160_v63 = vadd.f32 %v1159_v59, %v1097_v60  ;;  %v1102_v12 = vmul.f32 %v2005_v51, %v2005_v51 }
 0x183   :  { %v1161_v0 = vadd.f32 %v1160_v63, %v1098_v38  ;;  %v1029_v40 = vadd.f32 %v1028_v62, %v1991_v25  ;;  %v1103_v25 = vmul.f32 %v2011_v2, %v2011_v2 }
 0x185   :  { %v1030_v48 = vadd.f32 %v1029_v40, %v2015_v11  ;;  %v1162_v5 = vadd.f32 %v1161_v0, %v1099_v52  ;;  %v1104_v11 = vmul.f32 %v2035_v58, %v2035_v58 }
 0x187   :  { %v1163_v7 = vadd.f32 %v1162_v5, %v1100_v33  ;;  %v1031_v41 = vadd.f32 %v1030_v48, %v2020_v19 }
 0x189   :  { %v1032_v9 = vadd.f32 %v1031_v41, %v2005_v51  ;;  %v1164_v10 = vadd.f32 %v1163_v7, %v1101_v8  ;;  %v1106_v51 = vmul.f32 %v2025_v29, %v2025_v29 }
 0x18b   :  { %v1165_v13 = vadd.f32 %v1164_v10, %v1102_v12  ;;  %v1033_v15 = vadd.f32 %v1032_v9, %v2011_v2  ;;  %v1107_v2 = vmul.f32 %v2031_v46, %v2031_v46 }
 0x18d   :  { %v1034_v16 = vadd.f32 %v1033_v15, %v2035_v58  ;;  %v1166_v18 = vadd.f32 %v1165_v13, %v1103_v25  ;;  %v1108_v58 = vmul.f32 %v2055_v42, %v2055_v42 }
 0x18f   :  { %v1167_v20 = vadd.f32 %v1166_v18, %v1104_v11  ;;  %v1035_v19 = vadd.f32 %v1034_v16, %v2040_v1 }
 0x191   :  { %v1036_v56 = vadd.f32 %v1035_v19, %v2025_v29  ;;  %v1168_v23 = vadd.f32 %v1167_v20, %v1105_v22  ;;  %v1110_v29 = vmul.f32 %v2045_v14, %v2045_v14 }
 0x193   :  { %v1169_v44 = vadd.f32 %v1168_v23, %v1106_v51  ;;  %v1037_v26 = vadd.f32 %v1036_v56, %v2031_v46  ;;  %v1111_v46 = vmul.f32 %v2051_v31, %v2051_v31 }
 0x195   :  { %v1038_v28 = vadd.f32 %v1037_v26, %v2055_v42  ;;  %v1170_v53 = vadd.f32 %v1169_v44, %v1107_v2  ;;  %v1112_v42 = vmul.f32 %v2075_v27, %v2075_v27 }
 0x197   :  { %v1171_v32 = vadd.f32 %v1170_v53, %v1108_v58  ;;  %v1039_v1 = vadd.f32 %v1038_v28, %v2060_v54 }
 0x199   :  { %v1040_v24 = vadd.f32 %v1039_v1, %v2045_v14  ;;  %v1172_v35 = vadd.f32 %v1171_v32, %v1109_v34  ;;  %v1114_v14 = vmul.f32 %v2065_v4, %v2065_v4 }
 0x19b   :  { %v1173_v36 = vadd.f32 %v1172_v35, %v1110_v29  ;;  %v1041_v37 = vadd.f32 %v1040_v24, %v2051_v31  ;;  %v1115_v31 = vmul.f32 %v2071_v21, %v2071_v21 }
 0x19d   :  { %v1042_v30 = vadd.f32 %v1041_v37, %v2075_v27  ;;  %v1174_v39 = vadd.f32 %v1173_v36, %v1111_v46 }
 0x19f   :  { %v1175_v6 = vadd.f32 %v1174_v39, %v1112_v42  ;;  %v1043_v54 = vadd.f32 %v1042_v30, %v2080_v45 }
 0x1a1   :  { %v1044_v47 = vadd.f32 %v1043_v54, %v2065_v4  ;;  %v1176_v17 = vadd.f32 %v1175_v6, %v1113_v43 }
 0x1a3   :  { %v1045_v49 = vadd.f32 %v1044_v47, %v2071_v21  ;;  %v1177_v50 = vadd.f32 %v1176_v17, %v1114_v14 }
 0x1a5   :  { %v1046_v27 = vrot.slane %v1045_v49, 4  ;;  %v1178_v61 = vadd.f32 %v1177_v50, %v1115_v31 }
 0x1a7   :  { %v1047_v55 = vadd.f32 %v1046_v27, %v1045_v49  ;;  %v1179_v57 = vrot.slane %v1178_v61, 4 }
 0x1a9   :  { %v1048_v59 = vrot.slane %v1047_v55, 2  ;;  %v1180_v3 = vadd.f32 %v1179_v57, %v1178_v61 }
 0x1ab   :  { %v1049_v60 = vadd.f32 %v1048_v59, %v1047_v55  ;;  %v1181_v45 = vrot.slane %v1180_v3, 2 }
 0x1ad   :  { %v1050_v38 = vrot.slane %v1049_v60, 1  ;;  %v1182_v62 = vadd.f32 %v1181_v45, %v1180_v3 }
 0x1af   :  { %v1183_v63 = vrot.slane %v1182_v62, 1  ;;  %v1051_v4 = vadd.f32 %v1050_v38, %v1049_v60 }
 0x1b1   :  { %v1184_v52 = vadd.f32 %v1183_v63, %v1182_v62 }
 0x1b3   :  { %v1186_v0 = vsel %vm1185_vm0, %v1051_v4, %v1184_v52 }
 0x1b4   :  { %1187 = vst [vmem:[#allocation8] sm:$0x3] %v1186_v0 }
 0x1b5   :  { %1839 = shalt.err (!%p1836_p0)
}
 0x1b6   :  { %s1840_s30 = scalar_lea.hbm %s2211_s4, 32 }
 0x1b7   :  { %p1841_p1 = scmp.ne.s32.totalorder %s2211_s4, %s1840_s30  ;;  %p1844_p2 = scmp.lt.u32.totalorder %s1840_s30, %s2211_s4 }
 0x1b9   :  { %p1846_p3 = pnand %p1844_p2, %p1841_p1 }
 0x1bb   :  { %1849 = shalt.err (!%p1846_p3)
}
 0x1bc   :  { %1209 = dma.vmem_to_hbm [thread:$0]  %s1207_s25, 32, %s2211_s4, [#allocation9]  }
 0x1bd   :  { %1854 = dma.done.wait [#allocation4], 4096  }
 0x1be   :  { %1855 = vsyncadd [#allocation4], 4294963200 }
 0x1bf   :  { %1856 = dma.done.wait [#allocation9], 32  }
 0x1c0   :  { %1857 = vsyncadd [#allocation9], 4294967264 }
 0x1c1   :  { %1216 = vsyncpa [#allocation3], 1 }
 0x1c2   :  { %1217 = vsyncpa [#allocation6], 1 }
 0x1c3   :  { %1218 = vsyncpa [#allocation4], 1 }
 0x1c4   :  { %1219 = vsyncpa [#allocation9], 1 }

</bundles_post_ra>
